<compile_context>
chip_gen: v7x
topology: tpu7x:2x2x1
jax: 0.10.0
libtpu: 0.0.40
codegen_flags: <defaults>
</compile_context>

<pallas_src>
import functools

import jax
import jax.numpy as jnp
from jax.experimental import pallas as pl
from jax.experimental.pallas import tpu as pltpu


def _round_up(x, m):
    return (x + m - 1) // m * m


def _gap_classifier_kernel(x_ref, w_ref, b_ref, out_ref, acc_ref, *, inv_hw):
    # x_ref:   (TB, C, THW)   one spatial tile of the flattened image block
    # w_ref:   (C, N_pad)     fused encoder-proj @ classifier weight (resident)
    # b_ref:   (1, N_pad)     fused bias (resident)
    # out_ref: (TB, N_pad)    logits for this batch tile (written on last HW tile)
    # acc_ref: (TB, C) f32    running spatial sum (scratch, persists across HW tiles)
    hw_idx = pl.program_id(1)

    @pl.when(hw_idx == 0)
    def _init():
        acc_ref[...] = jnp.zeros_like(acc_ref)

    # Partial spatial sum for this tile; lane-axis reduce goes to the XLU and
    # hides under the DMA of the next tile.  Accumulate in f32.
    x = x_ref[...].astype(jnp.float32)
    acc_ref[...] += jnp.sum(x, axis=-1)

    @pl.when(hw_idx == pl.num_programs(1) - 1)
    def _finalize():
        pooled = acc_ref[...] * inv_hw  # divide by the true H*W exactly once
        logits = jnp.dot(pooled, w_ref[...], preferred_element_type=jnp.float32)
        out_ref[...] = (logits + b_ref[...]).astype(out_ref.dtype)


def pretrained_image_classifier(x_nchw, w_enc, b_enc, w_cls, b_cls,
                                *, block_b=8, block_hw=2048, image_dtype=None):
    """x_nchw: (B, C, H, W).  Returns (B, num_cls) float32 logits.

    block_b:     batch tile (multiple of 8; full B used when B < block_b).
    block_hw:    spatial tile (rounded to a multiple of 128).
    image_dtype: optional narrow dtype (e.g. jnp.bfloat16) for the image DMA.
    """
    B, C, H, W = x_nchw.shape
    feature_dim = w_enc.shape[1]
    num_cls = w_cls.shape[0]
    HW = H * W

    # ---- fuse encoder projection + classifier into one affine map ----------
    w_comb = (w_enc.astype(jnp.float32) @ w_cls.T.astype(jnp.float32))      # (C, num_cls)
    b_comb = (b_enc.astype(jnp.float32) @ w_cls.T.astype(jnp.float32)
              + b_cls.astype(jnp.float32))                                  # (num_cls,)

    # Pad num_cls up to a lane-dense multiple of 128 (unmasked output stores).
    n_pad = _round_up(num_cls, 128)
    if n_pad != num_cls:
        w_comb = jnp.pad(w_comb, ((0, 0), (0, n_pad - num_cls)))
        b_comb = jnp.pad(b_comb, (0, n_pad - num_cls))
    b_comb = b_comb.reshape(1, n_pad)

    # ---- prepare the image: flatten spatial, optional bf16 narrowing -------
    x_flat = x_nchw.reshape(B, C, HW)
    if image_dtype is not None:
        x_flat = x_flat.astype(image_dtype)

    # Spatial tile: multiple of 128; zero-pad ragged tail (zeros don't bias
    # the sum because we divide by the true H*W, not the padded extent).
    thw = min(block_hw, _round_up(HW, 128))
    thw = max(128, (thw // 128) * 128)
    hw_pad = _round_up(HW, thw)
    if hw_pad != HW:
        x_flat = jnp.pad(x_flat, ((0, 0), (0, 0), (0, hw_pad - HW)))

    # Batch tile: full B when small, otherwise a multiple-of-8 tile + zero pad.
    if B <= block_b:
        tb, b_pad = B, B
    else:
        tb = block_b
        b_pad = _round_up(B, tb)
        if b_pad != B:
            x_flat = jnp.pad(x_flat, ((0, b_pad - B), (0, 0), (0, 0)))

    grid = (b_pad // tb, hw_pad // thw)  # reduction axis (HW) last

    x_spec = pl.BlockSpec((tb, C, thw), lambda i, k: (i, 0, k))
    w_spec = pl.BlockSpec((C, n_pad), lambda i, k: (0, 0))      # stays resident
    b_spec = pl.BlockSpec((1, n_pad), lambda i, k: (0, 0))      # stays resident
    out_spec = pl.BlockSpec((tb, n_pad), lambda i, k: (i, 0))

    # Explicit VMEM budget: 2x double-buffered x tile + resident weights +
    # output/accumulator + headroom, clamped to [16 MiB, 64 MiB] (v7x-safe).
    x_tile_bytes = tb * C * thw * x_flat.dtype.itemsize
    w_bytes = (C + 1) * n_pad * 4
    working_set = 2 * x_tile_bytes + 2 * w_bytes + 2 * tb * n_pad * 4 + tb * C * 4
    vmem_limit = int(max(16 << 20, min(64 << 20, working_set + (4 << 20))))

    kernel = functools.partial(_gap_classifier_kernel, inv_hw=1.0 / float(HW))

    out = pl.pallas_call(
        kernel,
        out_shape=jax.ShapeDtypeStruct((b_pad, n_pad), jnp.float32),
        grid=grid,
        in_specs=[x_spec, w_spec, b_spec],
        out_specs=out_spec,
        scratch_shapes=[pltpu.VMEM((tb, C), jnp.float32)],
        compiler_params=pltpu.CompilerParams(
            dimension_semantics=("parallel", "arbitrary"),
            vmem_limit_bytes=vmem_limit),
    )(x_flat, w_comb, b_comb)

    return out[:B, :num_cls]


def _reference(x_nchw, w_enc, b_enc, w_cls, b_cls):
    pooled = jnp.mean(x_nchw.astype(jnp.float32), axis=(2, 3))
    feats = pooled @ w_enc + b_enc
    return feats @ w_cls.T + b_cls


if __name__ == "__main__":
    # Small shapes consistent with the module's forward.
    B, C, H, W = 2, 4, 16, 16
    feature_dim, num_cls = 32, 8

    key = jax.random.PRNGKey(0)
    kx, ke, kbe, kc, kbc = jax.random.split(key, 5)

    x = jax.random.normal(kx, (B, C, H, W), dtype=jnp.float32)
    w_enc = jax.random.uniform(ke, (C, feature_dim), jnp.float32,
                               minval=-(C ** -0.5), maxval=C ** -0.5)
    b_enc = jax.random.uniform(kbe, (feature_dim,), jnp.float32,
                               minval=-(C ** -0.5), maxval=C ** -0.5)
    w_cls = jax.random.uniform(kc, (num_cls, feature_dim), jnp.float32,
                               minval=-(feature_dim ** -0.5), maxval=feature_dim ** -0.5)
    b_cls = jax.random.uniform(kbc, (num_cls,), jnp.float32,
                               minval=-(feature_dim ** -0.5), maxval=feature_dim ** -0.5)

    ref = _reference(x, w_enc, b_enc, w_cls, b_cls)

    # f32 path; block_hw=128 forces a multi-step HW reduction (exercises the
    # accumulator init/finalize path) at these small shapes.
    pred = pretrained_image_classifier(x, w_enc, b_enc, w_cls, b_cls, block_hw=128)
    pred = jax.block_until_ready(pred)
    assert pred.shape == (B, num_cls)
    assert jnp.allclose(pred, ref, atol=1e-4, rtol=1e-4), "mismatch vs reference (f32)"

    # bf16 image path (half the HBM traffic); f32 accumulation keeps it close.
    pred_bf16 = pretrained_image_classifier(x, w_enc, b_enc, w_cls, b_cls,
                                            block_hw=128, image_dtype=jnp.bfloat16)
    pred_bf16 = jax.block_until_ready(pred_bf16)
    assert jnp.allclose(pred_bf16, ref, atol=5e-2, rtol=5e-2), "mismatch vs reference (bf16)"

    print("KERNEL_OK")
</pallas_src>

<mosaic_0001>
module attributes {stable_mosaic.version = 11 : i64} {
  func.func @_gap_classifier_kernel(%arg0: i32, %arg1: i32, %arg2: memref<2x4x128xf32, #tpu.memory_space<vmem>>, %arg3: memref<4x128xf32, #tpu.memory_space<vmem>>, %arg4: memref<1x128xf32, #tpu.memory_space<vmem>>, %arg5: memref<2x128xf32, #tpu.memory_space<vmem>>, %arg6: memref<2x4xf32, #tpu.memory_space<vmem>>) attributes {dimension_semantics = [#tpu.dimension_semantics<parallel>, #tpu.dimension_semantics<arbitrary>], iteration_bounds = array<i64: 1, 2>, scalar_prefetch = 0 : i64, scratch_operands = 1 : i64, tpu.core_type = #tpu.core_type<tc>, window_params = [{transform_indices = @transform_0, window_bounds = array<i64: 2, 4, 128>}, {pipeline_mode = #tpu.pipeline_mode<synchronous>, transform_indices = @transform_1, window_bounds = array<i64: 4, 128>}, {pipeline_mode = #tpu.pipeline_mode<synchronous>, transform_indices = @transform_2, window_bounds = array<i64: 1, 128>}, {transform_indices = @transform_3, window_bounds = array<i64: 2, 128>}]} {
    %c0_i32 = arith.constant 0 : i32
    %0 = arith.cmpi eq, %arg1, %c0_i32 : i32
    %1 = arith.extui %0 : i1 to i32
    %c0_i32_0 = arith.constant 0 : i32
    %2 = arith.cmpi ne, %1, %c0_i32_0 : i32
    scf.if %2 {
      %cst_8 = arith.constant 0.000000e+00 : f32
      %11 = vector.broadcast %cst_8 : f32 to vector<2x4xf32>
      %c0_9 = arith.constant 0 : index
      %c0_10 = arith.constant 0 : index
      %12 = vector.load %arg6[%c0_9, %c0_10] : memref<2x4xf32, #tpu.memory_space<vmem>>, vector<2x4xf32>
      tpu.vector_store %arg6[%c0_9, %c0_10], %11 {strides = array<i32>} : memref<2x4xf32, #tpu.memory_space<vmem>>, vector<2x4xf32>,
    } else {
    }
    %c0 = arith.constant 0 : index
    %c0_1 = arith.constant 0 : index
    %c0_2 = arith.constant 0 : index
    %3 = vector.load %arg2[%c0, %c0_1, %c0_2] : memref<2x4x128xf32, #tpu.memory_space<vmem>>, vector<2x4x128xf32>
    %c0_3 = arith.constant 0 : index
    %c0_4 = arith.constant 0 : index
    %4 = vector.load %arg6[%c0_3, %c0_4] : memref<2x4xf32, #tpu.memory_space<vmem>>, vector<2x4xf32>
    %cst = arith.constant dense<0.000000e+00> : vector<2x4xf32>
    %5 = vector.multi_reduction <add>, %3, %cst [2] : vector<2x4x128xf32> to vector<2x4xf32>
    %6 = arith.addf %4, %5 : vector<2x4xf32>
    %c0_5 = arith.constant 0 : index
    %c0_6 = arith.constant 0 : index
    %7 = vector.load %arg6[%c0_5, %c0_6] : memref<2x4xf32, #tpu.memory_space<vmem>>, vector<2x4xf32>
    tpu.vector_store %arg6[%c0_5, %c0_6], %6 {strides = array<i32>} : memref<2x4xf32, #tpu.memory_space<vmem>>, vector<2x4xf32>,
    %c1_i32 = arith.constant 1 : i32
    %8 = arith.cmpi eq, %arg1, %c1_i32 : i32
    %9 = arith.extui %8 : i1 to i32
    %c0_i32_7 = arith.constant 0 : i32
    %10 = arith.cmpi ne, %9, %c0_i32_7 : i32
    scf.if %10 {
      %c0_8 = arith.constant 0 : index
      %c0_9 = arith.constant 0 : index
      %11 = vector.load %arg6[%c0_8, %c0_9] : memref<2x4xf32, #tpu.memory_space<vmem>>, vector<2x4xf32>
      %cst_10 = arith.constant 3.906250e-03 : f32
      %12 = vector.broadcast %cst_10 : f32 to vector<2x4xf32>
      %13 = arith.mulf %11, %12 : vector<2x4xf32>
      %c0_11 = arith.constant 0 : index
      %c0_12 = arith.constant 0 : index
      %14 = vector.load %arg3[%c0_11, %c0_12] : memref<4x128xf32, #tpu.memory_space<vmem>>, vector<4x128xf32>
      %cst_13 = arith.constant dense<0.000000e+00> : vector<2x128xf32>
      %15 = tpu.matmul %13, %14, %cst_13 {dimension_numbers = #tpu.dot_dimension_numbers<[1], [0], [0], [1], [0, 0, 1, 1], [], []>} : vector<2x4xf32>, vector<4x128xf32>, vector<2x128xf32> -> vector<2x128xf32>
      %c0_14 = arith.constant 0 : index
      %c0_15 = arith.constant 0 : index
      %16 = vector.load %arg4[%c0_14, %c0_15] : memref<1x128xf32, #tpu.memory_space<vmem>>, vector<1x128xf32>
      %17 = vector.broadcast %16 : vector<1x128xf32> to vector<2x128xf32>
      %18 = arith.addf %15, %17 : vector<2x128xf32>
      %c0_16 = arith.constant 0 : index
      %c0_17 = arith.constant 0 : index
      %19 = vector.load %arg5[%c0_16, %c0_17] : memref<2x128xf32, #tpu.memory_space<vmem>>, vector<2x128xf32>
      tpu.vector_store %arg5[%c0_16, %c0_17], %18 {strides = array<i32>} : memref<2x128xf32, #tpu.memory_space<vmem>>, vector<2x128xf32>,
    } else {
    }
    return
  }
  func.func @transform_0(%arg0: i32, %arg1: i32) -> (i32, i32, i32) {
    %c0_i32 = arith.constant 0 : i32
    %c0_i32_0 = arith.constant 0 : i32
    return %arg0, %c0_i32, %arg1 : i32, i32, i32
  }
  func.func @transform_1(%arg0: i32, %arg1: i32) -> (i32, i32) {
    %c0_i32 = arith.constant 0 : i32
    %c0_i32_0 = arith.constant 0 : i32
    %c0_i32_1 = arith.constant 0 : i32
    return %c0_i32, %c0_i32_0 : i32, i32
  }
  func.func @transform_2(%arg0: i32, %arg1: i32) -> (i32, i32) {
    %c0_i32 = arith.constant 0 : i32
    %c0_i32_0 = arith.constant 0 : i32
    %c0_i32_1 = arith.constant 0 : i32
    return %c0_i32, %c0_i32_0 : i32, i32
  }
  func.func @transform_3(%arg0: i32, %arg1: i32) -> (i32, i32) {
    %c0_i32 = arith.constant 0 : i32
    %c0_i32_0 = arith.constant 0 : i32
    return %arg0, %c0_i32 : i32, i32
  }
}

</mosaic_0001>

<bundles_post_ra>
// kernel: tpu_custom_call.1
= control target key start
LH: loop header
LB: loop body
LE: loop exit
PB: predicated region body
PF: predicated region fallthrough
CT: control target
= control target key end

     0   :  { %8 = vsyncpa [#allocation4], 0  ;;  %s894_s0 = inlined_call_operand.hbm [shape: f32[2,4,256], index: 0, kind: input, shape index: {}]   ;;  %s895_s1 = inlined_call_operand.hbm [shape: f32[4,128], index: 1, kind: input, shape index: {}]   ;;  %s896_s2 = inlined_call_operand.vmem [shape: f32[1,128], index: 2, kind: input, shape index: {}]   ;;  %s897_s3 = inlined_call_operand.hbm [shape: f32[2,128], index: 3, kind: output, shape index: {}]  }
   0x1   :  { %10 = vsyncpa [#allocation4 + $0x1], 0 }
   0x2   :  { %11 = vsyncpa [#allocation7], 0 }
   0x3   :  { %12 = vsyncpa [#allocation5], 0  ;;  %s697_s12 = smov 0   ;;  %s699_s13 = smov 0  }
   0x4   :  { %s701_s14 = smov 0   ;;  %s703_s15 = smov 0  }
   0x5   :  { %s705_s16 = smov 0   ;;  %s707_s17 = smov 0  }
   0x6 LB: > { %s420_s18 = sadd.s32 4294967295, %s666_s17   ;;  %s39_s19 = sadd.s32 1, %s654_s14  ;;  %s666_s17 = sphi %s707_s17, %s18_s17   ;;  %s662_s16 = sphi %s705_s16, %s917_s16   ;;  %s658_s15 = sphi %s703_s15, %s916_s15   ;;  %s654_s14 = sphi %s701_s14, %s915_s14   ;;  %s650_s13 = sphi %s699_s13, %s914_s13   ;;  %s646_s12 = sphi %s697_s12, %s913_s12  }
   0x7   : > { %p46_p0 = scmp.ne.s32.totalorder %s654_s14, %s650_s13  ;;  %p47_p1 = scmp.eq.s32.totalorder %s666_s17, 0 }
   0x8   : > { %p52_p2 = scmp.ne.s32.totalorder %s650_s13, %s646_s12  ;;  %p733_p3 = scmp.eq.s32.totalorder %s420_s18, 0 }
   0x9   : > { %p48_p4 = por %p47_p1, %p46_p0  ;;  %p421_p5 = scmp.ge.s32.totalorder %s666_s17, 1 }
   0xa   : > { %s903_s20 = scalar_select %p733_p3, 1, 0 }
   0xb   : > { %p740_p6 = por %p733_p3, %p52_p2  ;;  %p131_p7 = scmp.lt.s32.totalorder %s666_s17, 3 }
   0xc   : > { %s668_s23 = smov [#allocation6]   ;;  %p464_p10 = scmp.lt.s32.totalorder %s666_s17, 2 }
   0xd   : > { %s904_s21 = scalar_select %p740_p6, 1, 0 }
   0xe   : > { %p745_p8 = pnand %p421_p5, %p131_p7  ;;  %s144_s24 = sshll.u32 %s668_s23, 4  ;;  %s145_s24 = int_to_ptr.vmem [resolvable:$true] %s144_s24 }
   0xf   : > { %s158_s25 = sand.u32 1, %s654_s14   ;;  %p759_p12 = pnand %p464_p10, %p48_p4 }
  0x10   : > { %s905_s22 = scalar_select %p745_p8, 1, 0 }
  0x11   : > { %p455_p9 = pneg %p745_p8  ;;  %s524_s30 = scalar_lea.hbm %s895_s1, 64 }
  0x12   : > { %s907_s27 = scalar_select %p759_p12, 1, 0 }
  0x13   : > { %p755_p11 = pnand %p455_p9, %p733_p3  ;;  %p525_p13 = scmp.ne.s32.totalorder %s895_s1, %s524_s30 }
  0x14   : > { %p531_p5 = scmp.lt.u32.totalorder %s524_s30, %s895_s1 }
  0x15   : > { %p526_p0 = pneg %p755_p11 }
  0x17   : > { %p527_p1 = pnand %p526_p0, %p525_p13 }
  0x19   : > { %p528_p2 = pneg %p527_p1 }
  0x1b   : > { %p533_p4 = pnand %p531_p5, %p528_p2 }
  0x1d   : > { %536 = shalt.err (!%p533_p4)
}
  0x1e   : > { %s537_s8 = scalar_lea.vmem %s145_s24, 64  ;;  %p545_p3 = scmp.lt.s32.totalorder %s145_s24, %s145_s24 }
  0x1f   : > { %p538_p7 = scmp.ne.s32.totalorder %s145_s24, %s537_s8  ;;  %p546_p6 = scmp.lt.s32.totalorder %s537_s8, %s537_s8 }
  0x21   : > { %p540_p9 = pnand %p538_p7, %p526_p0  ;;  %p547_p8 = por %p546_p6, %p545_p3 }
  0x23   : > { %p541_p10 = pneg %p540_p9 }
  0x25   : > { %p548_p12 = pnand %p547_p8, %p541_p10 }
  0x27   : > { %551 = shalt.err (!%p548_p12)
}
  0x28   : > { %458 = dma.hbm_to_vmem [thread:$0]  (!%p755_p11), %s895_s1, 64, %s145_s24, [#allocation7]  }
  0x29   : > { %s27_s11 = sadd.s32 1, %s662_s16  ;;  %s424_s12 = sshll.u32 %s158_s25, 3 }
  0x2a   : > { %p28_p3 = scmp.ge.s32.totalorder %s27_s11, 2  ;;  %s425_s23 = sshll.u32 %s662_s16, 6 }
  0x2b   : > { %s162_s28 = scalar_lea.vmem [#allocation3], %s424_s12  ;;  %s788_s4 = scalar_lea.hbm %s894_s0, %s425_s23 }
  0x2c   : > { %s171_s26 = sshll.u32 %s162_s28, 4  ;;  %s919_s11 = smov (%p28_p3, %s27_s11), 0  ;;  %s790_s26 = int_to_ptr.vmem [resolvable:$true] %s171_s26 }
  0x2d   : > { %s35_s24 = ssub.s32 %s662_s16, %s919_s11  ;;  %s801_s6 = scalar_lea.sflag [#allocation4], %s158_s25 }
  0x2e   : > { %p37_p6 = scmp.eq.s32.totalorder %s35_s24, 0  ;;  %s552_s7 = scalar_lea.hbm %s788_s4, 128 }
  0x2f   : > { %p553_p8 = scmp.ne.s32.totalorder %s788_s4, %s552_s7  ;;  %p908_p11 = scmp.ne.s32.totalorder %s907_s27, 0 }
  0x30   : > { %s797_s5 = scalar_select %p37_p6, %s654_s14, %s39_s19  }
  0x31   : > { %p554_p12 = pneg %p908_p11  ;;  %s557_s10 = scalar_lea.hbm %s894_s0, 256 }
  0x32   : > { %p558_p1 = scmp.lt.u32.totalorder %s788_s4, %s894_s0  ;;  %p559_p2 = scmp.lt.u32.totalorder %s557_s10, %s552_s7 }
  0x33   : > { %p555_p13 = pnand %p554_p12, %p553_p8  ;;  %p561_p4 = scmp.lt.u32.totalorder %s552_s7, %s788_s4 }
  0x34   : > { %p560_p5 = por %p559_p2, %p558_p1 }
  0x35   : > { %p556_p0 = pneg %p555_p13 }
  0x36   : > { %p562_p7 = por %p561_p4, %p560_p5 }
  0x38   : > { %p563_p9 = pnand %p562_p7, %p556_p0 }
  0x3a   : > { %566 = shalt.err (!%p563_p9)
}
  0x3b   : > { %s567_s19 = scalar_lea.vmem %s790_s26, 128  ;;  %s669_s25 = smov [#allocation3]  }
  0x3c   : > { %p568_p10 = scmp.ne.s32.totalorder %s790_s26, %s567_s19  ;;  %s572_s28 = sshll.u32 %s669_s25, 4  ;;  %s573_s28 = int_to_ptr.vmem [resolvable:$false] %s572_s28 }
  0x3d   : > { %s574_s29 = scalar_lea.vmem %s573_s28, 256  ;;  %p575_p8 = scmp.lt.s32.totalorder %s790_s26, %s573_s28 }
  0x3e   : > { %p570_p3 = pnand %p568_p10, %p554_p12  ;;  %p576_p13 = scmp.lt.s32.totalorder %s574_s29, %s567_s19 }
  0x40   : > { %p571_p6 = pneg %p570_p3  ;;  %p577_p1 = por %p576_p13, %p575_p8 }
  0x42   : > { %p578_p2 = pnand %p577_p1, %p571_p6 }
  0x44   : > { %581 = shalt.err (!%p578_p2)
}
  0x45   : > { %s670_s30 = smov 128   ;;  %s671_s24 = smov 64  }
  0x46   : > { %s672_s7 = smov 4   ;;  %p909_p12 = scmp.ne.s32.totalorder %s905_s22, 0 }
  0x47   : > { %462 = dma.hbm_to_vmem [thread:$0]  (!%p908_p11), %s788_s4, 128, %s790_s26, %s801_s6, %s670_s30, %s671_s24, %s672_s7  }
  0x48   : > { %183 = sbr.rel (%p909_p12) target bundleno = 495 (0x1ef), region = 32  ;;  %s185_s8 = sand.u32 (!%p909_p12), 1, %s650_s13  }
  0x49   : > { %s427_s9 = sshll.u32 (!%p909_p12), %s185_s8, 3  ;;  %s186_s10 = scalar_lea.sflag (!%p909_p12), [#allocation4], %s185_s8 }
  0x4a   : > { %s189_s12 = scalar_lea.vmem (!%p909_p12), [#allocation3], %s427_s9  ;;  %p910_p0 = scmp.ne.s32.totalorder (!%p909_p12), %s904_s21, 0 }
  0x4f   : > { %633 = dma.done.wait (%p910_p0), %s186_s10, 128  }
  0x50   : > { %635 = vsyncadd (%p910_p0), %s186_s10, 4294967168  ;;  %p911_p5 = scmp.ne.s32.totalorder %s903_s20, 0 }
  0x52   : > { %637 = dma.done.wait (%p911_p5), [#allocation7], 64  }
  0x53   : > { %639 = vsyncadd (%p911_p5), [#allocation7], 4294967232  ;;  %p429_p11 = scmp.ne.s32.totalorder %s658_s15, 0 }
  0x54   : > { %vm216_vm0 = vcmask (!%p429_p11), 25600   ;;  %v673_v0 = vmov (!%p429_p11), 0.0  }
  0x55   : > { %215 = sbr.rel (%p429_p11) target bundleno = 92 (0x5c), region = 44  ;;  %217 = vst.msk [vmem:[#allocation2] sm:$0x3] (!%p429_p11), %vm216_vm0, %v673_v0 }
  0x5c PF: > { %v218_v1 = vld [vmem:[%s189_s12] sm:$0xf]  ;;  %vm221_vm1 = vcmask 1043456   ;;  %v219_v2 = vld [vmem:[%s189_s12 + $0x4] sm:$0xf]  ;;  %v230_v5 = vlaneseq  ;;  %vm240_vm2 = vcmask 1041409  }
  0x5d   : > { %v222_v3 = vsel %vm221_vm1, %v218_v1, 0.0  ;;  %v225_v4 = vsel %vm221_vm1, %v219_v2, 0.0  ;;  %v220_v12 = vld [vmem:[#allocation2] sm:$0x3]  ;;  %vm244_vm3 = vcmask 25600   ;;  %p430_p4 = scmp.ne.s32.totalorder %s658_s15, 1 }
  0x5e   : > { %223 = vadd.xlane.f32.xlu0 %v222_v3  ;;  %v231_v6 = vand.u32 127, %v230_v5  ;;  %v233_v7 = vshrl.u32 %v230_v5, 7  ;;  %v252_v16 = vld [vmem:[#allocation6] sm:$0xf] (!%p430_p4)  ;;  %v674_v18 = vmov (!%p430_p4), 0.0   ;;  %vm675_vm4 = vmmov (!%p430_p4), 0  }
  0x5f   : > { %440 = vmatprep.subr.mxu0 (!%p430_p4), %v674_v18  ;;  %442 = vmatprep.mubr.msk.f32.mxu0 (!%p430_p4), %vm675_vm4, %v674_v18  ;;  %vm260_vm5 = vcmask (!%p430_p4), 31744   ;;  %v431_v20 = vld [vmem:[%s896_s2] ss:$0 sm:$0xff] (!%p430_p4) }
  0x60   : > { %v234_v9 = vsub.s32 %v231_v6, %v233_v7  ;;  %441 = vmatpush3.msk.msra.mxu0 (!%p430_p4), %vm221_vm1, %v252_v16 }
  0x62   : > { %226 = vadd.xlane.f32.xlu0 %v225_v4 }
  0xeb   : > { %v224_v8 = vpop.xlane.xlu0 %223 }
  0xec   : > { %v235_v11 = vrot.slane %v224_v8, %v234_v9 }
  0xef   : > { %v227_v10 = vpop.xlane.xlu0 %226  ;;  %249 = sbr.rel (%p430_p4) target bundleno = 470 (0x1d6), region = 48 }
  0xf0   : > { %v239_v13 = vrot.slane %v227_v10, %v234_v9 }
  0xf2   : > { %v241_v14 = vsel %vm240_vm2, %v239_v13, %v235_v11 }
  0xf3   : > { %v243_v15 = vadd.f32 %v241_v14, %v220_v12 }
  0xf5   : > { %245 = vst.msk [vmem:[#allocation2] sm:$0x3] %vm244_vm3, %v243_v15 }
  0xfc   : > { %v250_v17 = vld [vmem:[#allocation2] sm:$0x3] }
  0xfd   : > { %v251_v19 = vmul.f32 0.00390625, %v250_v17 }
  0xff   : > { %443 = vmatmul.mubr.msk.f32.vlgmr.msra.gmra.mrb[0].mxu0 %vm260_vm5, %v251_v19 }
 0x1d2   : > { %v333_v21 = vpop.f32.mrb[0].mxu0 }
 0x1d3   : > { %v334_v22 = vadd.f32 %v431_v20, %v333_v21  ;;  %v444_v23 = vpop.f32.mrb[1].mxu0 }
 0x1d5   : > { %337 = vst [vmem:[#allocation8] sm:$0x3] %v334_v22 }
 0x1d6 PF: > { %p850_p7 = scmp.eq.s32.totalorder %s420_s18, 1  ;;  %s676_s22 = smov [#allocation8]  }
 0x1d7   : > { %s347_s27 = sshll.u32 %s676_s22, 4  ;;  %s348_s27 = int_to_ptr.vmem [resolvable:$true] %s347_s27 }
 0x1d8   : > { %s582_s26 = scalar_lea.vmem %s348_s27, 32  ;;  %p589_p6 = scmp.lt.s32.totalorder %s348_s27, %s348_s27 }
 0x1d9   : > { %p583_p9 = scmp.ne.s32.totalorder %s348_s27, %s582_s26  ;;  %p590_p8 = scmp.lt.s32.totalorder %s582_s26, %s582_s26 }
 0x1db   : > { %p584_p10 = pnand %p583_p9, %p850_p7  ;;  %p591_p13 = por %p590_p8, %p589_p6 }
 0x1dd   : > { %p585_p3 = pneg %p584_p10 }
 0x1df   : > { %p592_p1 = pnand %p591_p13, %p585_p3 }
 0x1e1   : > { %595 = shalt.err (!%p592_p1)
}
 0x1e2   : > { %s596_s18 = scalar_lea.hbm %s897_s3, 32 }
 0x1e3   : > { %p597_p2 = scmp.ne.s32.totalorder %s897_s3, %s596_s18  ;;  %p602_p5 = scmp.lt.u32.totalorder %s596_s18, %s897_s3 }
 0x1e5   : > { %p598_p12 = pnand %p597_p2, %p850_p7 }
 0x1e7   : > { %p599_p0 = pneg %p598_p12 }
 0x1e9   : > { %p604_p11 = pnand %p602_p5, %p599_p0 }
 0x1eb   : > { %607 = shalt.err (!%p604_p11)
}
 0x1ec   : > { %452 = dma.vmem_to_hbm [thread:$0]  (%p850_p7), %s348_s27, 32, %s897_s3, [#allocation5]  }
 0x1ed   : > { %641 = dma.done.wait (%p850_p7), [#allocation5], 32  }
 0x1ee   : > { %643 = vsyncadd (%p850_p7), [#allocation5], 4294967264 }
 0x1ef PF: > { %s18_s17 = sadd.s32 1, %s666_s17   ;;  %s913_s12 = smov %s650_s13 }
 0x1f0   : > { %p15_p4 = scmp.ge.s32.totalorder %s18_s17, 4   ;;  %s914_s13 = smov %s654_s14 }
 0x1f1   : > { %s915_s14 = smov %s797_s5  ;;  %s916_s15 = smov %s662_s16 }
 0x1f2   : > { %s917_s16 = smov %s919_s11  ;;  %17 = sbr.rel (!%p15_p4) target bundleno = 6 (0x6), region = 82 }
 0x1f9   :  { %360 = vsyncpa [#allocation4], 1 }
 0x1fa   :  { %362 = vsyncpa [#allocation4 + $0x1], 1 }
 0x1fb   :  { %363 = vsyncpa [#allocation7], 1 }
 0x1fc   :  { %364 = vsyncpa [#allocation5], 1 }
 0x1fd   :  { %366 = vsyncpa [#allocation5 + $0x1], 1 }

</bundles_post_ra>
